<compile_context>
chip_gen: v7x
topology: tpu7x:2x2x1
jax: 0.10.0
libtpu: 0.0.40
codegen_flags: <defaults>
</compile_context>

<pallas_src>
import jax
import jax.numpy as jnp
import numpy as np
from jax.experimental import pallas as pl
from jax.experimental.pallas import tpu as pltpu


def _gaussian_kernel_body(x_ref, w2_ref, w1_ref, b_ref, o_ref):
    # x_ref : (d, TM)  lane-dense tile of flattened input points
    # w2_ref: (N, d)   -a^2                     (a^2 = 0.5 / (widths + eps)^2)
    # w1_ref: (N, d)   +2 * a^2 * c
    # b_ref : (N, 1)   -sum_k a^2 * c^2
    # o_ref : (N, TM)  output activities (lane-dense)
    hp = jax.lax.Precision.HIGHEST  # full-f32 MXU passes; MXU has huge slack at K=d
    x = x_ref[...].astype(jnp.float32)                          # (d, TM)
    q = jnp.dot(w2_ref[...], x * x, precision=hp,
                preferred_element_type=jnp.float32)             # (N, TM)  MXU
    lin = jnp.dot(w1_ref[...], x, precision=hp,
                  preferred_element_type=jnp.float32)           # (N, TM)  MXU
    # exponent = -sum_k a^2 (x - c)^2 : negation already folded into W2/W1/b,
    # so the epilogue is a single EUP exp straight into the output block.
    o_ref[...] = jnp.exp(q + lin + b_ref[...]).astype(o_ref.dtype)


def _round_up(x, m):
    return ((x + m - 1) // m) * m


def _cdiv(a, b):
    return -(-a // b)


def gaussian_kernel_forward(x, kernel_centers, kernel_widths, *, eps=0.1,
                            tile_m=32768, out_dtype=jnp.float32,
                            lane_dense_output=False):
    """Diag-covariance Gaussian kernel activities.

    x: (..., d) -> (..., N)   (or (N, ...) if lane_dense_output=True).

    out_dtype=jnp.bfloat16 halves the dominant HBM writeback (recommended when
    the consumer tolerates it).  lane_dense_output=True skips the wrapper-side
    output transpose (an extra full-size HBM pass) and returns (N, ...).
    tile_m: max lane tile along the flattened batch dim (sweep 16K-64K).
    """
    d, n = kernel_centers.shape
    assert x.shape[-1] == d, "last dim of x must be the coordinate dimension d"
    batch_shape = x.shape[:-1]
    m = int(np.prod(batch_shape)) if batch_shape else 1

    # Hoist all divides + quadratic-expansion coefficients out of the kernel
    # (tiny (d, N) ops, done once).
    a2 = 0.5 / jnp.square(kernel_widths.astype(jnp.float32) + jnp.float32(eps))  # (d, N)
    c = kernel_centers.astype(jnp.float32)                                       # (d, N)
    w2 = (-a2).T                                       # (N, d)
    w1 = (2.0 * a2 * c).T                              # (N, d)
    b = -(jnp.sum(a2 * c * c, axis=0))[:, None]        # (N, 1)

    # Lane-dense input: flattened batch M on the lane (last) axis.
    x2d = x.reshape(m, d).astype(jnp.float32).T        # (d, M)

    # Balanced tiling: cap tail padding at < 128*num_tiles, and give the grid
    # >= 2 steps when there is enough work so v7x megacore gets both cores.
    num_tiles = max(_cdiv(m, int(tile_m)), min(2, _cdiv(m, 128)))
    tile = _round_up(_cdiv(m, num_tiles), 128)
    m_pad = tile * num_tiles
    if m_pad != m:
        # zero padding -> exponent <= 0 -> finite activities, sliced off below
        x2d = jnp.pad(x2d, ((0, 0), (0, m_pad - m)))

    out = pl.pallas_call(
        _gaussian_kernel_body,
        out_shape=jax.ShapeDtypeStruct((n, m_pad), out_dtype),
        grid_spec=pltpu.PrefetchScalarGridSpec(
            num_scalar_prefetch=0,
            grid=(num_tiles,),
            in_specs=[
                pl.BlockSpec((d, tile), lambda i: (0, i)),   # x tile (lane-dense)
                pl.BlockSpec((n, d), lambda i: (0, 0)),      # W2 (resident)
                pl.BlockSpec((n, d), lambda i: (0, 0)),      # W1 (resident)
                pl.BlockSpec((n, 1), lambda i: (0, 0)),      # bias (resident)
            ],
            out_specs=pl.BlockSpec((n, tile), lambda i: (0, i)),
        ),
        compiler_params=pltpu.CompilerParams(
            dimension_semantics=("parallel",),
            vmem_limit_bytes=48 * 1024 * 1024,
        ),
    )(x2d, w2, w1, b)

    out = out[:, :m]
    if lane_dense_output:
        # (N, ...) layout; consumer folds the transpose into its next op.
        return out.reshape((n,) + batch_shape)
    # Module-faithful (..., N) layout (costs one extra HBM pass for the
    # transpose; use lane_dense_output=True or bf16 to reduce it).
    return out.T.reshape(*batch_shape, n)


def _reference(x, centers, widths, eps):
    # pure-JAX reference of the PyTorch forward (diag covariance)
    diff = (x[..., :, None] - centers) / (widths + eps)  # (..., d, N)
    return jnp.exp(-0.5 * jnp.sum(diff * diff, axis=-2))


if __name__ == "__main__":
    # module hyperparams
    d = 3          # coordinate dimension
    N = 32         # number of Gaussian kernels
    eps = 0.1

    key = jax.random.PRNGKey(0)
    k_x, k_c, k_w = jax.random.split(key, 3)
    # kaiming_normal_(mode='fan_in') scale for a (d, N) tensor: std = sqrt(2/N)
    std = (2.0 / N) ** 0.5
    kernel_centers = std * jax.random.normal(k_c, (d, N), dtype=jnp.float32)
    # abs(): the PyTorch init can put widths+eps near zero (latent numerical
    # hazard also present in the reference); keep the test data away from that
    # singularity so the f32 tolerance is meaningful.
    kernel_widths = jnp.abs(std * jax.random.normal(k_w, (d, N), dtype=jnp.float32))

    # input: (B, L, Kmax, d) per the module docstring; B*L*Kmax deliberately
    # not a multiple of 128 to exercise the padding path.
    B, L, Kmax = 2, 8, 4
    x = jax.random.normal(k_x, (B, L, Kmax, d), dtype=jnp.float32)

    ref = _reference(x, kernel_centers, kernel_widths, eps)

    # f32 path (module-faithful layout & dtype)
    act = gaussian_kernel_forward(x, kernel_centers, kernel_widths, eps=eps)
    act = jax.block_until_ready(act)
    assert act.shape == (B, L, Kmax, N)
    assert jnp.allclose(act, ref, atol=1e-3, rtol=1e-3)

    # bf16 output path (halves HBM writeback), looser tolerance
    act_bf16 = gaussian_kernel_forward(x, kernel_centers, kernel_widths, eps=eps,
                                       out_dtype=jnp.bfloat16)
    act_bf16 = jax.block_until_ready(act_bf16)
    assert jnp.allclose(act_bf16.astype(jnp.float32), ref, atol=1e-2, rtol=3e-2)

    # lane-dense (N, ...) output path (skips the wrapper-side transpose pass)
    act_ld = gaussian_kernel_forward(x, kernel_centers, kernel_widths, eps=eps,
                                     lane_dense_output=True)
    act_ld = jax.block_until_ready(act_ld)
    assert act_ld.shape == (N, B, L, Kmax)
    assert jnp.allclose(jnp.moveaxis(act_ld, 0, -1), ref, atol=1e-3, rtol=1e-3)

    print("KERNEL_OK")
</pallas_src>

<mosaic_0001>
module attributes {stable_mosaic.version = 11 : i64} {
  func.func @_gaussian_kernel_body(%arg0: i32, %arg1: memref<3x128xf32, #tpu.memory_space<vmem>>, %arg2: memref<32x3xf32, #tpu.memory_space<vmem>>, %arg3: memref<32x3xf32, #tpu.memory_space<vmem>>, %arg4: memref<32x1xf32, #tpu.memory_space<vmem>>, %arg5: memref<32x128xf32, #tpu.memory_space<vmem>>) attributes {dimension_semantics = [#tpu.dimension_semantics<parallel>], iteration_bounds = array<i64: 1>, scalar_prefetch = 0 : i64, scratch_operands = 0 : i64, tpu.core_type = #tpu.core_type<tc>, window_params = [{transform_indices = @transform_0, window_bounds = array<i64: 3, 128>}, {pipeline_mode = #tpu.pipeline_mode<synchronous>, transform_indices = @transform_1, window_bounds = array<i64: 32, 3>}, {pipeline_mode = #tpu.pipeline_mode<synchronous>, transform_indices = @transform_2, window_bounds = array<i64: 32, 3>}, {pipeline_mode = #tpu.pipeline_mode<synchronous>, transform_indices = @transform_3, window_bounds = array<i64: 32, 1>}, {transform_indices = @transform_4, window_bounds = array<i64: 32, 128>}]} {
    %c0 = arith.constant 0 : index
    %c0_0 = arith.constant 0 : index
    %0 = vector.load %arg1[%c0, %c0_0] : memref<3x128xf32, #tpu.memory_space<vmem>>, vector<3x128xf32>
    %c0_1 = arith.constant 0 : index
    %c0_2 = arith.constant 0 : index
    %1 = vector.load %arg2[%c0_1, %c0_2] : memref<32x3xf32, #tpu.memory_space<vmem>>, vector<32x3xf32>
    %2 = arith.mulf %0, %0 : vector<3x128xf32>
    %cst = arith.constant dense<0.000000e+00> : vector<32x128xf32>
    %3 = tpu.matmul %1, %2, %cst {dimension_numbers = #tpu.dot_dimension_numbers<[1], [0], [0], [1], [0, 0, 1, 1], [], []>, precision = #tpu.contract_precision<fp32>} : vector<32x3xf32>, vector<3x128xf32>, vector<32x128xf32> -> vector<32x128xf32>
    %c0_3 = arith.constant 0 : index
    %c0_4 = arith.constant 0 : index
    %4 = vector.load %arg3[%c0_3, %c0_4] : memref<32x3xf32, #tpu.memory_space<vmem>>, vector<32x3xf32>
    %cst_5 = arith.constant dense<0.000000e+00> : vector<32x128xf32>
    %5 = tpu.matmul %4, %0, %cst_5 {dimension_numbers = #tpu.dot_dimension_numbers<[1], [0], [0], [1], [0, 0, 1, 1], [], []>, precision = #tpu.contract_precision<fp32>} : vector<32x3xf32>, vector<3x128xf32>, vector<32x128xf32> -> vector<32x128xf32>
    %6 = arith.addf %3, %5 : vector<32x128xf32>
    %c0_6 = arith.constant 0 : index
    %c0_7 = arith.constant 0 : index
    %7 = vector.load %arg4[%c0_6, %c0_7] : memref<32x1xf32, #tpu.memory_space<vmem>>, vector<32x1xf32>
    %8 = vector.broadcast %7 : vector<32x1xf32> to vector<32x128xf32>
    %9 = arith.addf %6, %8 : vector<32x128xf32>
    %10 = math.exp %9 : vector<32x128xf32>
    %c0_8 = arith.constant 0 : index
    %c0_9 = arith.constant 0 : index
    %11 = vector.load %arg5[%c0_8, %c0_9] : memref<32x128xf32, #tpu.memory_space<vmem>>, vector<32x128xf32>
    tpu.vector_store %arg5[%c0_8, %c0_9], %10 {strides = array<i32>} : memref<32x128xf32, #tpu.memory_space<vmem>>, vector<32x128xf32>,
    return
  }
  func.func @transform_0(%arg0: i32) -> (i32, i32) {
    %c0_i32 = arith.constant 0 : i32
    %c0_i32_0 = arith.constant 0 : i32
    return %c0_i32, %arg0 : i32, i32
  }
  func.func @transform_1(%arg0: i32) -> (i32, i32) {
    %c0_i32 = arith.constant 0 : i32
    %c0_i32_0 = arith.constant 0 : i32
    %c0_i32_1 = arith.constant 0 : i32
    return %c0_i32, %c0_i32_0 : i32, i32
  }
  func.func @transform_2(%arg0: i32) -> (i32, i32) {
    %c0_i32 = arith.constant 0 : i32
    %c0_i32_0 = arith.constant 0 : i32
    %c0_i32_1 = arith.constant 0 : i32
    return %c0_i32, %c0_i32_0 : i32, i32
  }
  func.func @transform_3(%arg0: i32) -> (i32, i32) {
    %c0_i32 = arith.constant 0 : i32
    %c0_i32_0 = arith.constant 0 : i32
    %c0_i32_1 = arith.constant 0 : i32
    return %c0_i32, %c0_i32_0 : i32, i32
  }
  func.func @transform_4(%arg0: i32) -> (i32, i32) {
    %c0_i32 = arith.constant 0 : i32
    %c0_i32_0 = arith.constant 0 : i32
    return %c0_i32, %arg0 : i32, i32
  }
}

</mosaic_0001>

<bundles_post_ra>
// kernel: tpu_custom_call.1
= control target key start
LH: loop header
LB: loop body
LE: loop exit
PB: predicated region body
PF: predicated region fallthrough
CT: control target
= control target key end

     0   :  { %vm41_vm0 = vcmask 1042432   ;;  %vm28_vm1 = vcmask 23552   ;;  %s1736_s0 = inlined_call_operand.vmem [shape: f32[3,128], index: 0, kind: input, shape index: {}]   ;;  %s1737_s1 = inlined_call_operand.vmem [shape: f32[32,3], index: 1, kind: input, shape index: {}]   ;;  %s1738_s2 = inlined_call_operand.vmem [shape: f32[32,3], index: 2, kind: input, shape index: {}]   ;;  %s1739_s3 = inlined_call_operand.vmem [shape: f32[32,1], index: 3, kind: input, shape index: {}]   ;;  %s1740_s4 = inlined_call_operand.hbm [shape: f32[32,128], index: 4, kind: output, shape index: {}]  }
   0x1   :  { %v18_v0 = vld [vmem:[%s1736_s0] sm:$0x7]  ;;  %v25_v7 = vld [vmem:[%s1738_s2 + $0x8] sm:$0xff]  ;;  %v26_v9 = vld [vmem:[%s1738_s2 + $0x10] sm:$0xff] }
   0x2   :  { %v24_v1 = vld [vmem:[%s1738_s2] sm:$0xff]  ;;  %v43_v3 = vsel %vm41_vm0, %v18_v0, 0  ;;  %v23_v4 = vmul.f32 %v18_v0, %v18_v0  ;;  %v20_v8 = vld [vmem:[%s1737_s1 + $0x8] sm:$0xff]  ;;  %v33_v13 = vsel %vm28_vm1, %v25_v7, 0  ;;  %v21_v14 = vld [vmem:[%s1737_s1 + $0x10] sm:$0xff]  ;;  %v36_v18 = vsel %vm28_vm1, %v26_v9, 0 }
   0x3   :  { %v19_v2 = vld [vmem:[%s1737_s1] sm:$0xff]  ;;  %v30_v5 = vsel %vm28_vm1, %v24_v1, 0  ;;  %v1554_v10 = vand.u32 4294901760, %v43_v3  ;;  %v1565_v16 = vand.u32 4294901760, %v33_v13  ;;  %v624_v17 = vsel %vm28_vm1, %v20_v8, 0 }
   0x4   :  { %v621_v6 = vsel %vm28_vm1, %v19_v2, 0  ;;  %v1556_v11 = vand.u32 4294901760, %v30_v5  ;;  %v633_v15 = vsel %vm41_vm0, %v23_v4, 0  ;;  %v1578_v22 = vand.u32 4294901760, %v624_v17 }
   0x5   :  { %v1558_v12 = vand.u32 4294901760, %v621_v6  ;;  %1326 = vmatprep.subr.mxu1 %v1554_v10  ;;  %v1570_v19 = vand.u32 4294901760, %v633_v15  ;;  %v1582_v23 = vsub.f32 %v33_v13, %v1565_v16  ;;  %v1585_v24 = vsub.f32 %v43_v3, %v1554_v10 }
   0x6   :  { %v1573_v20 = vsub.f32 %v30_v5, %v1556_v11  ;;  %1327 = vmatpush3.msra.mxu1 %v1554_v10  ;;  %v1587_v25 = vand.u32 4294901760, %v36_v18  ;;  %v627_v26 = vsel %vm28_vm1, %v21_v14, 0 }
   0x7   :  { %v1576_v21 = vsub.f32 %v621_v6, %v1558_v12 }
   0x8   :  { %9 = vsyncpa [#allocation3], 0  ;;  %1374 = vmatprep.subr.mxu0 %v1570_v19  ;;  %v113_v27 = vand.u32 4294901760, %v1573_v20  ;;  %v1594_v29 = vsub.f32 %v624_v17, %v1578_v22  ;;  %v1597_v30 = vsub.f32 %v633_v15, %v1570_v19  ;;  %v123_v31 = vand.u32 4294901760, %v1582_v23  ;;  %v27_v43 = vld [vmem:[%s1738_s2 + $0x18] sm:$0xff]  ;;  %v1210_v0 = vld [vmem:[%s1739_s3] sm:$0xff] }
   0x9   :  { %v703_v28 = vand.u32 4294901760, %v1576_v21  ;;  %1375 = vmatpush3.msra.mxu0 %v1570_v19  ;;  %v1602_v32 = vand.u32 4294901760, %v1585_v24  ;;  %v1605_v33 = vsub.f32 %v36_v18, %v1587_v25  ;;  %v1607_v34 = vand.u32 4294901760, %v627_v26  ;;  %v22_v44 = vld [vmem:[%s1737_s1 + $0x18] sm:$0xff]  ;;  %v1212_v1 = vld [vmem:[%s1739_s3 + $0x10] sm:$0xff]  ;;  %v1211_v9 = vld [vmem:[%s1739_s3 + $0x8] sm:$0xff] }
   0xa   :  { %v114_v35 = vsub.f32 %v1573_v20, %v113_v27  ;;  %v713_v37 = vand.u32 4294901760, %v1594_v29  ;;  %v1617_v38 = vand.u32 4294901760, %v1597_v30  ;;  %v124_v39 = vsub.f32 %v1582_v23, %v123_v31  ;;  %v1213_v13 = vld [vmem:[%s1739_s3 + $0x18] sm:$0xff]  ;;  %s1505_s3 = smov [#allocation2]  }
   0xb   :  { %v704_v36 = vsub.f32 %v1576_v21, %v703_v28  ;;  %v155_v40 = vsub.f32 %v1585_v24, %v1602_v32  ;;  %v133_v41 = vand.u32 4294901760, %v1605_v33  ;;  %v1626_v42 = vsub.f32 %v627_v26, %v1607_v34  ;;  %s1255_s12 = sshll.u32 %s1505_s3, 4  ;;  %s1256_s12 = int_to_ptr.vmem [resolvable:$true] %s1255_s12 }
   0xc   :  { %v115_v45 = vand.u32 4294901760, %v114_v35  ;;  %v714_v47 = vsub.f32 %v1594_v29, %v713_v37  ;;  %v745_v48 = vsub.f32 %v1597_v30, %v1617_v38  ;;  %v125_v49 = vand.u32 4294901760, %v124_v39  ;;  %s1480_s13 = scalar_lea.vmem %s1256_s12, 512  ;;  %p1485_p1 = scmp.lt.s32.totalorder %s1256_s12, %s1256_s12 }
   0xd   :  { %v705_v46 = vand.u32 4294901760, %v704_v36  ;;  %v156_v50 = vand.u32 4294901760, %v155_v40  ;;  %v134_v51 = vsub.f32 %v1605_v33, %v133_v41  ;;  %v723_v52 = vand.u32 4294901760, %v1626_v42  ;;  %p1481_p0 = scmp.ne.s32.totalorder %s1256_s12, %s1480_s13  ;;  %p1486_p2 = scmp.lt.s32.totalorder %s1480_s13, %s1480_s13 }
   0xe   :  { %1328 = vmatprep.mubr.f32.mxu1 %v115_v45  ;;  %v715_v53 = vand.u32 4294901760, %v714_v47  ;;  %v746_v54 = vand.u32 4294901760, %v745_v48  ;;  %v39_v55 = vsel %vm28_vm1, %v27_v43, 0  ;;  %v630_v56 = vsel %vm28_vm1, %v22_v44, 0 }
   0xf   :  { %1376 = vmatprep.mubr.f32.mxu0 %v705_v46  ;;  %1329 = vmatmul.mubr.f32.vlgmr.msra.gmra.mrb[0].mxu1 %v125_v49  ;;  %v135_v57 = vand.u32 4294901760, %v134_v51  ;;  %v724_v58 = vsub.f32 %v1626_v42, %v723_v52  ;;  %v1648_v59 = vand.u32 4294901760, %v39_v55  ;;  %v1650_v60 = vand.u32 4294901760, %v630_v56  ;;  %p1487_p3 = por %p1486_p2, %p1485_p1 }
  0x10   :  { %1334 = vmatprep.subr.mxu1 %v156_v50  ;;  %1377 = vmatmul.mubr.f32.vlgmr.msra.gmra.mrb[0].mxu0 %v715_v53  ;;  %v1504_v4 = vmov 0  }
  0x11   :  { %1382 = vmatprep.subr.mxu0 %v746_v54  ;;  %1335 = vmatpush3.msra.mxu1 %v156_v50  ;;  %v725_v61 = vand.u32 4294901760, %v724_v58  ;;  %v142_v62 = vsub.f32 %v39_v55, %v1648_v59  ;;  %v732_v63 = vsub.f32 %v630_v56, %v1650_v60  ;;  %p1488_p4 = pnand %p1487_p3, %p1481_p0 }
  0x12   :  { %1383 = vmatpush3.msra.mxu0 %v746_v54  ;;  %1331 = vmatprep.mubr.f32.mxu1 %v135_v57 }
  0x13   :  { %1342 = vmatprep.subr.mxu1 %v1585_v24  ;;  %1379 = vmatprep.mubr.f32.mxu0 %v725_v61  ;;  %v143_v2 = vand.u32 4294901760, %v142_v62  ;;  %v733_v3 = vand.u32 4294901760, %v732_v63 }
  0x14   :  { %1390 = vmatprep.subr.mxu0 %v1597_v30  ;;  %1470 = vset.pattern.permute.xlu0 %v1504_v4 }
  0x15   :  { %1471 = vset.pattern.permute.xlu1 %v1504_v4  ;;  %v144_v5 = vsub.f32 %v142_v62, %v143_v2  ;;  %v734_v6 = vsub.f32 %v732_v63, %v733_v3  ;;  %1216 = vperm.xlu0 %1470, %v1210_v0  }
  0x16   :  { %1226 = vperm.xlu1 %1471, %v1212_v1  }
  0x17   :  { %v145_v7 = vand.u32 4294901760, %v144_v5  ;;  %v735_v8 = vand.u32 4294901760, %v734_v6 }
  0x19   :  { %1332 = vmatmul.mubr.f32.gmra.mrb[2].mxu1 %v145_v7  ;;  %1380 = vmatmul.mubr.f32.gmra.mrb[2].mxu0 %v735_v8 }
  0x1a   :  { %1336 = vmatprep.mubr.f32.mxu1 %v1556_v11  ;;  %1384 = vmatprep.mubr.f32.mxu0 %v1558_v12 }
  0x1b   :  { %1221 = vperm.xlu0 %1470, %v1211_v9   ;;  %1231 = vperm.xlu1 %1471, %v1213_v13  }
  0x1d   :  { %1337 = vmatmul.mubr.f32.vlgmr.msra.gmra.mrb[0].mxu1 %v1565_v16  ;;  %1385 = vmatmul.mubr.f32.vlgmr.msra.gmra.mrb[0].mxu0 %v1578_v22 }
  0x1e   :  { %1343 = vmatpush3.msra.mxu1 %v1585_v24  ;;  %1391 = vmatpush3.msra.mxu0 %v1597_v30 }
  0x1f   :  { %1339 = vmatprep.mubr.f32.mxu1 %v1587_v25  ;;  %1387 = vmatprep.mubr.f32.mxu0 %v1607_v34 }
  0x20   :  { %1350 = vmatprep.subr.mxu1 %v1554_v10  ;;  %1398 = vmatprep.subr.mxu0 %v1570_v19 }
  0x21   :  { %1340 = vmatmul.mubr.f32.gmra.mrb[2].mxu1 %v1648_v59  ;;  %1388 = vmatmul.mubr.f32.gmra.mrb[2].mxu0 %v1650_v60 }
  0x22   :  { %1344 = vmatprep.mubr.f32.mxu1 %v1573_v20  ;;  %1392 = vmatprep.mubr.f32.mxu0 %v1576_v21 }
  0x25   :  { %1345 = vmatmul.mubr.f32.vlgmr.msra.gmra.mrb[0].mxu1 %v1582_v23  ;;  %1393 = vmatmul.mubr.f32.vlgmr.msra.gmra.mrb[0].mxu0 %v1594_v29 }
  0x26   :  { %1351 = vmatpush3.msra.mxu1 %v1554_v10  ;;  %1399 = vmatpush3.msra.mxu0 %v1570_v19 }
  0x27   :  { %1347 = vmatprep.mubr.f32.mxu1 %v1605_v33  ;;  %1395 = vmatprep.mubr.f32.mxu0 %v1626_v42 }
  0x28   :  { %1358 = vmatprep.subr.mxu1 %v1602_v32  ;;  %1406 = vmatprep.subr.mxu0 %v1617_v38 }
  0x29   :  { %1348 = vmatmul.mubr.f32.gmra.mrb[2].mxu1 %v142_v62  ;;  %1396 = vmatmul.mubr.f32.gmra.mrb[2].mxu0 %v732_v63 }
  0x2a   :  { %1352 = vmatprep.mubr.f32.mxu1 %v113_v27  ;;  %1400 = vmatprep.mubr.f32.mxu0 %v703_v28 }
  0x2d   :  { %1353 = vmatmul.mubr.f32.vlgmr.msra.gmra.mrb[0].mxu1 %v123_v31  ;;  %1401 = vmatmul.mubr.f32.vlgmr.msra.gmra.mrb[0].mxu0 %v713_v37 }
  0x2e   :  { %1359 = vmatpush3.msra.mxu1 %v1602_v32  ;;  %1407 = vmatpush3.msra.mxu0 %v1617_v38 }
  0x2f   :  { %1355 = vmatprep.mubr.f32.mxu1 %v133_v41  ;;  %1403 = vmatprep.mubr.f32.mxu0 %v723_v52 }
  0x30   :  { %1366 = vmatprep.subr.mxu1 %v1554_v10  ;;  %1414 = vmatprep.subr.mxu0 %v1570_v19 }
  0x31   :  { %1356 = vmatmul.mubr.f32.gmra.mrb[2].mxu1 %v143_v2  ;;  %1404 = vmatmul.mubr.f32.gmra.mrb[2].mxu0 %v733_v3 }
  0x32   :  { %1360 = vmatprep.mubr.f32.mxu1 %v1556_v11  ;;  %1408 = vmatprep.mubr.f32.mxu0 %v1558_v12 }
  0x35   :  { %1361 = vmatmul.mubr.f32.vlgmr.msra.gmra.mrb[0].mxu1 %v1565_v16  ;;  %1409 = vmatmul.mubr.f32.vlgmr.msra.gmra.mrb[0].mxu0 %v1578_v22 }
  0x36   :  { %1367 = vmatpush3.msra.mxu1 %v1554_v10  ;;  %1415 = vmatpush3.msra.mxu0 %v1570_v19 }
  0x37   :  { %1363 = vmatprep.mubr.f32.mxu1 %v1587_v25  ;;  %1411 = vmatprep.mubr.f32.mxu0 %v1607_v34 }
  0x39   :  { %1364 = vmatmul.mubr.f32.gmra.mrb[2].mxu1 %v1648_v59  ;;  %1412 = vmatmul.mubr.f32.gmra.mrb[2].mxu0 %v1650_v60 }
  0x3a   :  { %1368 = vmatprep.mubr.f32.mxu1 %v1556_v11  ;;  %1416 = vmatprep.mubr.f32.mxu0 %v1558_v12 }
  0x3d   :  { %1369 = vmatmul.mubr.f32.vlgmr.msra.gmra.mrb[0].mxu1 %v1565_v16  ;;  %1417 = vmatmul.mubr.f32.vlgmr.msra.gmra.mrb[0].mxu0 %v1578_v22 }
  0x3e   :  { %1371 = vmatprep.mubr.f32.mxu1 %v1587_v25  ;;  %1419 = vmatprep.mubr.f32.mxu0 %v1607_v34 }
  0x41   :  { %1372 = vmatmul.mubr.f32.gmra.mrb[2].mxu1 %v1648_v59  ;;  %1420 = vmatmul.mubr.f32.gmra.mrb[2].mxu0 %v1650_v60 }
  0x94   :  { %v1217_v10 = vpop.permute.xlu0 %1216 }
  0x95   :  { %v1227_v14 = vpop.permute.xlu1 %1226 }
  0x9a   :  { %v1222_v15 = vpop.permute.xlu0 %1221  ;;  %v1232_v29 = vpop.permute.xlu1 %1231 }
 0x110   :  { %v1370_v17 = vpop.f32.mrb[0].mxu1  ;;  %v1418_v18 = vpop.f32.mrb[0].mxu0 }
 0x111   :  { %v1422_v11 = vadd.f32 %v1418_v18, %v1370_v17  ;;  %v598_v19 = vpop.f32.mrb[1].mxu1  ;;  %v1188_v12 = vpop.f32.mrb[1].mxu0 }
 0x112   :  { %v1423_v20 = vadd.f32 %v1188_v12, %v598_v19 }
 0x113   :  { %v1235_v16 = vadd.f32 %v1422_v11, %v1222_v15 }
 0x114   :  { %v1234_v21 = vadd.f32 %v1423_v20, %v1217_v10  ;;  %v1373_v22 = vpop.f32.mrb[2].mxu1  ;;  %v1421_v23 = vpop.f32.mrb[2].mxu0 }
 0x115   :  { %v1240_v24 = vmul.f32 1.442695, %v1235_v16  ;;  %v1424_v25 = vadd.f32 %v1421_v23, %v1373_v22  ;;  %v610_v26 = vpop.f32.mrb[3].mxu1  ;;  %v1200_v27 = vpop.f32.mrb[3].mxu0 }
 0x116   :  { %v1238_v28 = vmul.f32 1.442695, %v1234_v21  ;;  %v1425_v30 = vadd.f32 %v1200_v27, %v610_v26 }
 0x117   :  { %1472 = vpow2.f32 %v1240_v24  ;;  %v1237_v31 = vadd.f32 %v1424_v25, %v1232_v29 }
 0x118   :  { %1474 = vpow2.f32 %v1238_v28  ;;  %v1236_v32 = vadd.f32 %v1425_v30, %v1227_v14 }
 0x119   :  { %v1244_v33 = vmul.f32 1.442695, %v1237_v31 }
 0x11a   :  { %v1242_v34 = vmul.f32 1.442695, %v1236_v32 }
 0x11b   :  { %1476 = vpow2.f32 %v1244_v33 }
 0x11c   :  { %1478 = vpow2.f32 %v1242_v34 }
 0x121   :  { %v1473_v35 = vpop.eup %1472 }
 0x122   :  { %v1475_v36 = vpop.eup %1474  ;;  %1247 = vst [vmem:[#allocation2 + $0x8] sm:$0xff] %v1473_v35 }
 0x123   :  { %1246 = vst [vmem:[#allocation2] sm:$0xff] %v1475_v36 }
 0x125   :  { %v1477_v37 = vpop.eup %1476 }
 0x126   :  { %v1479_v38 = vpop.eup %1478  ;;  %1249 = vst [vmem:[#allocation2 + $0x18] sm:$0xff] %v1477_v37 }
 0x127   :  { %1248 = vst [vmem:[#allocation2 + $0x10] sm:$0xff] %v1479_v38 }
 0x128   :  { %1491 = shalt.err (!%p1488_p4)
}
 0x129   :  { %s1492_s16 = scalar_lea.hbm %s1740_s4, 512 }
 0x12a   :  { %p1493_p5 = scmp.ne.s32.totalorder %s1740_s4, %s1492_s16  ;;  %p1496_p6 = scmp.lt.u32.totalorder %s1492_s16, %s1740_s4 }
 0x12c   :  { %p1498_p7 = pnand %p1496_p6, %p1493_p5 }
 0x12e   :  { %1501 = shalt.err (!%p1498_p7)
}
 0x12f   :  { %s1506_s21 = smov 128   ;;  %s1507_s22 = smov 8  }
 0x130   :  { %1261 = dma.vmem_to_hbm [thread:$0]  %s1256_s12, 512, %s1740_s4, [#allocation3], %s1506_s21, %s1506_s21, %s1507_s22  }
 0x131   :  { %1502 = dma.done.wait [#allocation3], 512  }
 0x132   :  { %1503 = vsyncadd [#allocation3], 4294966784 }
 0x133   :  { %1265 = vsyncpa [#allocation3], 1 }

</bundles_post_ra>
